<compile_context>
chip_gen: v7x
topology: tpu7x:2x2x1
jax: 0.10.0
libtpu: 0.0.40
codegen_flags: <defaults>
</compile_context>

<pallas_src>
import functools

import jax
import jax.numpy as jnp
from jax import lax
from jax.experimental import pallas as pl
from jax.experimental.pallas import tpu as pltpu


def _round_up(a, b):
    return -(-a // b) * b


def _local_hist_kernel(x_ref, ct_ref, csq_ref, o_ref, *, inv_two_sigma_sq, mxu_dtype):
    # x_ref:   (TN, Cin_p)      f32 batch tile
    # ct_ref:  (Cin_p, Cout_p)  pre-transposed bin centers (resident, mxu_dtype)
    # csq_ref: (1, Cout_p)      precomputed |c|^2 per bin (resident, f32)
    # o_ref:   (Cout_p, Cin_p)  f32 partial histogram; its block index is
    #                           constant over the reduction axis, so it stays
    #                           VMEM-resident and we accumulate in place.
    @pl.when(pl.program_id(1) == 0)
    def _init():
        o_ref[...] = jnp.zeros_like(o_ref)

    x = x_ref[...]                                    # (TN, Cin_p) f32
    x_mxu = x.astype(mxu_dtype)

    # |x - c|^2 = |x|^2 - 2 x.c + |c|^2 ; the heavy x.c term runs on the MXU
    # against the pre-transposed resident centers (no in-kernel .T).
    x_sq = jnp.sum(x * x, axis=1, keepdims=True)      # (TN, 1) f32
    xc = jnp.dot(x_mxu, ct_ref[...],
                 preferred_element_type=jnp.float32)  # (TN, Cout_p) f32 acc
    distances = jnp.maximum(x_sq - 2.0 * xc + csq_ref[...], 0.0)

    rbf = jnp.exp(-distances * inv_two_sigma_sq)      # f32 EUP path

    # Partial histogram rbf^T @ x: contract the TN axis of both operands
    # directly (no materialized transpose), accumulate into the resident output.
    o_ref[...] += lax.dot_general(
        rbf.astype(mxu_dtype), x_mxu,
        dimension_numbers=(((0,), (0,)), ((), ())),
        preferred_element_type=jnp.float32)           # (Cout_p, Cin_p)


def local_histogram_layer2(x, bin_centers, sigma=1.0, *,
                           tile_n=1024, num_parallel=1,
                           mxu_dtype=jnp.float32, lane=128):
    """x: (N, C_in); bin_centers: (C_out, C_in) -> histogram (C_out, C_in) f32."""
    n, c_in = x.shape
    c_out, c_in2 = bin_centers.shape
    assert c_in == c_in2

    # Lane-dense channel padding (zero channels / bins are exact no-ops).
    c_in_p = _round_up(c_in, lane)
    c_out_p = _round_up(c_out, lane)

    # N tiling: big tiles (amortize ~0.35 us/step grid overhead), capped so the
    # double-buffered x tile stays well inside the scoped VMEM default on
    # v5e/v6e (32 MiB) and v7x's 64 MiB physical VMEM.
    n_per = -(-n // num_parallel)
    tn = min(_round_up(tile_n, 8), _round_up(n_per, 8))
    max_tile_rows = max(8, ((8 * 1024 * 1024) // (2 * c_in_p * 4) // 8) * 8)
    tn = max(8, min(tn, max_tile_rows))
    n_tiles = -(-n_per // tn)
    n_pad = num_parallel * n_tiles * tn

    # Host-side (XLA) prep: pad, pre-transpose centers, hoist |c|^2.
    xp = jnp.zeros((n_pad, c_in_p), jnp.float32).at[:n, :c_in].set(
        x.astype(jnp.float32))
    cp = jnp.zeros((c_out_p, c_in_p), jnp.float32).at[:c_out, :c_in].set(
        bin_centers.astype(jnp.float32))
    ct = cp.T.astype(mxu_dtype)                       # (Cin_p, Cout_p)
    csq = jnp.sum(cp * cp, axis=1)[None, :]           # (1, Cout_p) f32

    kernel = functools.partial(
        _local_hist_kernel,
        inv_two_sigma_sq=1.0 / (2.0 * float(sigma) ** 2),
        mxu_dtype=mxu_dtype)

    grid_spec = pltpu.PrefetchScalarGridSpec(
        num_scalar_prefetch=0,
        grid=(num_parallel, n_tiles),                 # reduction axis last
        in_specs=[
            pl.BlockSpec((tn, c_in_p), lambda p, i: (p * n_tiles + i, 0)),
            pl.BlockSpec((c_in_p, c_out_p), lambda p, i: (0, 0)),
            pl.BlockSpec((1, c_out_p), lambda p, i: (0, 0)),
        ],
        out_specs=pl.BlockSpec((None, c_out_p, c_in_p), lambda p, i: (p, 0, 0)),
    )

    partials = pl.pallas_call(
        kernel,
        out_shape=jax.ShapeDtypeStruct((num_parallel, c_out_p, c_in_p),
                                       jnp.float32),
        grid_spec=grid_spec,
        compiler_params=pltpu.CompilerParams(
            dimension_semantics=("parallel", "arbitrary")),
    )(xp, ct, csq)

    hist = jnp.sum(partials, axis=0)                  # combine parallel slices
    return hist[:c_out, :c_in]


def _reference(x, bin_centers, sigma=1.0):
    # Pure-JAX transcription of the PyTorch forward.
    distances = jnp.sum((x[:, None, :] - bin_centers[None, :, :]) ** 2, axis=2)
    rbf = jnp.exp(-distances / (2.0 * sigma ** 2))
    return jnp.sum(rbf[:, :, None] * x[:, None, :], axis=0)


if __name__ == "__main__":
    in_channels = 32
    out_channels = 16
    kernel_size = 3          # unused by the reference forward
    sigma = 1.0
    batch = 128

    key = jax.random.PRNGKey(0)
    k_x, k_c = jax.random.split(key, 2)

    # Scaled inputs keep the distances O(1) so the histogram is meaningfully
    # non-zero and the correctness check is non-trivial.
    x = 0.25 * jax.random.normal(k_x, (batch, in_channels), dtype=jnp.float32)
    bin_centers = 0.25 * jax.random.normal(
        k_c, (out_channels, in_channels), dtype=jnp.float32)
    bin_widths = jnp.ones((out_channels, in_channels), jnp.float32)  # unused

    ref = _reference(x, bin_centers, sigma=sigma)

    # 1) f32 MXU feed, single-step grid (whole batch in one tile).
    out_f32 = jax.block_until_ready(
        local_histogram_layer2(x, bin_centers, sigma=sigma,
                               mxu_dtype=jnp.float32))
    assert out_f32.shape == (out_channels, in_channels)
    assert jnp.allclose(out_f32, ref, atol=1e-4, rtol=1e-4), "f32 mismatch"

    # 2) bf16 MXU feed (native on v5e/v6e/v7x MXUs) + 2-way parallel N split
    #    (exercises the v7x dual-TensorCore / partial-output path).
    out_bf16 = jax.block_until_ready(
        local_histogram_layer2(x, bin_centers, sigma=sigma,
                               mxu_dtype=jnp.bfloat16, num_parallel=2))
    assert out_bf16.shape == (out_channels, in_channels)
    assert jnp.allclose(out_bf16, ref, atol=3e-2, rtol=3e-2), "bf16 mismatch"

    print("KERNEL_OK")
</pallas_src>

<mosaic_0001>
module attributes {stable_mosaic.version = 11 : i64} {
  func.func @_local_hist_kernel(%arg0: i32, %arg1: i32, %arg2: memref<128x128xf32, #tpu.memory_space<vmem>>, %arg3: memref<128x128xf32, #tpu.memory_space<vmem>>, %arg4: memref<1x128xf32, #tpu.memory_space<vmem>>, %arg5: memref<1x128x128xf32, #tpu.memory_space<vmem>>) attributes {dimension_semantics = [#tpu.dimension_semantics<parallel>, #tpu.dimension_semantics<arbitrary>], iteration_bounds = array<i64: 1, 1>, scalar_prefetch = 0 : i64, scratch_operands = 0 : i64, tpu.core_type = #tpu.core_type<tc>, window_params = [{transform_indices = @transform_0, window_bounds = array<i64: 128, 128>}, {pipeline_mode = #tpu.pipeline_mode<synchronous>, transform_indices = @transform_1, window_bounds = array<i64: 128, 128>}, {pipeline_mode = #tpu.pipeline_mode<synchronous>, transform_indices = @transform_2, window_bounds = array<i64: 1, 128>}, {transform_indices = @transform_3, window_bounds = array<i64: 1, 128, 128>}]} {
    %c0_i32 = arith.constant 0 : i32
    %0 = arith.cmpi eq, %arg1, %c0_i32 : i32
    %1 = arith.extui %0 : i1 to i32
    %c0_i32_0 = arith.constant 0 : i32
    %2 = arith.cmpi ne, %1, %c0_i32_0 : i32
    scf.if %2 {
      %cst_18 = arith.constant 0.000000e+00 : f32
      %30 = vector.broadcast %cst_18 : f32 to vector<128x128xf32>
      %c0_19 = arith.constant 0 : index
      %c0_20 = arith.constant 0 : index
      %c0_21 = arith.constant 0 : index
      %31 = vector.load %arg5[%c0_19, %c0_20, %c0_21] : memref<1x128x128xf32, #tpu.memory_space<vmem>>, vector<1x128x128xf32>
      %32 = vector.shape_cast %31 : vector<1x128x128xf32> to vector<128x128xf32>
      %33 = vector.shape_cast %30 : vector<128x128xf32> to vector<1x128x128xf32>
      tpu.vector_store %arg5[%c0_19, %c0_20, %c0_21], %33 {strides = array<i32>} : memref<1x128x128xf32, #tpu.memory_space<vmem>>, vector<1x128x128xf32>,
    } else {
    }
    %c0 = arith.constant 0 : index
    %c0_1 = arith.constant 0 : index
    %3 = vector.load %arg2[%c0, %c0_1] : memref<128x128xf32, #tpu.memory_space<vmem>>, vector<128x128xf32>
    %4 = arith.mulf %3, %3 : vector<128x128xf32>
    %cst = arith.constant dense<0.000000e+00> : vector<128xf32>
    %5 = vector.multi_reduction <add>, %4, %cst [1] : vector<128x128xf32> to vector<128xf32>
    %6 = vector.shape_cast %5 : vector<128xf32> to vector<128x1xf32>
    %c0_2 = arith.constant 0 : index
    %c0_3 = arith.constant 0 : index
    %7 = vector.load %arg3[%c0_2, %c0_3] : memref<128x128xf32, #tpu.memory_space<vmem>>, vector<128x128xf32>
    %cst_4 = arith.constant dense<0.000000e+00> : vector<128x128xf32>
    %8 = tpu.matmul %3, %7, %cst_4 {dimension_numbers = #tpu.dot_dimension_numbers<[1], [0], [0], [1], [0, 0, 1, 1], [], []>} : vector<128x128xf32>, vector<128x128xf32>, vector<128x128xf32> -> vector<128x128xf32>
    %cst_5 = arith.constant 2.000000e+00 : f32
    %9 = vector.broadcast %cst_5 : f32 to vector<128x128xf32>
    %10 = arith.mulf %9, %8 : vector<128x128xf32>
    %11 = vector.broadcast %6 : vector<128x1xf32> to vector<128x128xf32>
    %12 = arith.subf %11, %10 : vector<128x128xf32>
    %c0_6 = arith.constant 0 : index
    %c0_7 = arith.constant 0 : index
    %13 = vector.load %arg4[%c0_6, %c0_7] : memref<1x128xf32, #tpu.memory_space<vmem>>, vector<1x128xf32>
    %14 = vector.broadcast %13 : vector<1x128xf32> to vector<128x128xf32>
    %15 = arith.addf %12, %14 : vector<128x128xf32>
    %cst_8 = arith.constant 0.000000e+00 : f32
    %16 = vector.broadcast %cst_8 : f32 to vector<128x128xf32>
    %17 = arith.maximumf %15, %16 : vector<128x128xf32>
    %cst_9 = arith.constant 0.000000e+00 : f32
    %18 = vector.broadcast %cst_9 : f32 to vector<128x128xf32>
    %19 = arith.subf %18, %17 : vector<128x128xf32>
    %cst_10 = arith.constant 5.000000e-01 : f32
    %20 = vector.broadcast %cst_10 : f32 to vector<128x128xf32>
    %21 = arith.mulf %19, %20 : vector<128x128xf32>
    %22 = math.exp %21 : vector<128x128xf32>
    %c0_11 = arith.constant 0 : index
    %c0_12 = arith.constant 0 : index
    %c0_13 = arith.constant 0 : index
    %23 = vector.load %arg5[%c0_11, %c0_12, %c0_13] : memref<1x128x128xf32, #tpu.memory_space<vmem>>, vector<1x128x128xf32>
    %24 = vector.shape_cast %23 : vector<1x128x128xf32> to vector<128x128xf32>
    %cst_14 = arith.constant dense<0.000000e+00> : vector<128x128xf32>
    %25 = tpu.matmul %22, %3, %cst_14 {dimension_numbers = #tpu.dot_dimension_numbers<[0], [0], [1], [1], [0, 1, 1, 1], [], []>} : vector<128x128xf32>, vector<128x128xf32>, vector<128x128xf32> -> vector<128x128xf32>
    %26 = arith.addf %24, %25 : vector<128x128xf32>
    %c0_15 = arith.constant 0 : index
    %c0_16 = arith.constant 0 : index
    %c0_17 = arith.constant 0 : index
    %27 = vector.load %arg5[%c0_15, %c0_16, %c0_17] : memref<1x128x128xf32, #tpu.memory_space<vmem>>, vector<1x128x128xf32>
    %28 = vector.shape_cast %27 : vector<1x128x128xf32> to vector<128x128xf32>
    %29 = vector.shape_cast %26 : vector<128x128xf32> to vector<1x128x128xf32>
    tpu.vector_store %arg5[%c0_15, %c0_16, %c0_17], %29 {strides = array<i32>} : memref<1x128x128xf32, #tpu.memory_space<vmem>>, vector<1x128x128xf32>,
    return
  }
  func.func @transform_0(%arg0: i32, %arg1: i32) -> (i32, i32) {
    %c1_i32 = arith.constant 1 : i32
    %0 = arith.muli %arg0, %c1_i32 : i32
    %1 = arith.addi %0, %arg1 : i32
    %c0_i32 = arith.constant 0 : i32
    %c0_i32_0 = arith.constant 0 : i32
    return %1, %c0_i32 : i32, i32
  }
  func.func @transform_1(%arg0: i32, %arg1: i32) -> (i32, i32) {
    %c0_i32 = arith.constant 0 : i32
    %c0_i32_0 = arith.constant 0 : i32
    %c0_i32_1 = arith.constant 0 : i32
    return %c0_i32, %c0_i32_0 : i32, i32
  }
  func.func @transform_2(%arg0: i32, %arg1: i32) -> (i32, i32) {
    %c0_i32 = arith.constant 0 : i32
    %c0_i32_0 = arith.constant 0 : i32
    %c0_i32_1 = arith.constant 0 : i32
    return %c0_i32, %c0_i32_0 : i32, i32
  }
  func.func @transform_3(%arg0: i32, %arg1: i32) -> (i32, i32, i32) {
    %c0_i32 = arith.constant 0 : i32
    %c0_i32_0 = arith.constant 0 : i32
    %c0_i32_1 = arith.constant 0 : i32
    return %arg0, %c0_i32, %c0_i32_0 : i32, i32, i32
  }
}

</mosaic_0001>

<bundles_post_ra>
// kernel: tpu_custom_call.1
= control target key start
LH: loop header
LB: loop body
LE: loop exit
PB: predicated region body
PF: predicated region fallthrough
CT: control target
= control target key end

     0   :  { %8 = vsyncpa [#allocation3], 0  ;;  %s1180_s0 = inlined_call_operand.hbm [shape: f32[128,128], index: 0, kind: input, shape index: {}]   ;;  %s1181_s1 = inlined_call_operand.hbm [shape: f32[128,128], index: 1, kind: input, shape index: {}]   ;;  %s1182_s2 = inlined_call_operand.vmem [shape: f32[1,128], index: 2, kind: input, shape index: {}]   ;;  %s1183_s3 = inlined_call_operand.hbm [shape: f32[1,128,128], index: 3, kind: output, shape index: {}]  }
   0x1   :  { %9 = vsyncpa [#allocation6], 0 }
   0x2   :  { %10 = vsyncpa [#allocation4], 0  ;;  %s1023_s12 = smov [#allocation2]   ;;  %s951_s16 = scalar_lea.hbm %s1180_s0, 2048 }
   0x3   :  { %s20_s13 = sshll.u32 %s1023_s12, 4  ;;  %p952_p0 = scmp.ne.s32.totalorder %s1180_s0, %s951_s16  ;;  %s21_s13 = int_to_ptr.vmem [resolvable:$true] %s20_s13 }
   0x4   :  { %p955_p1 = scmp.lt.u32.totalorder %s951_s16, %s1180_s0 }
   0x6   :  { %p957_p2 = pnand %p955_p1, %p952_p0 }
   0x8   :  { %960 = shalt.err (!%p957_p2)
}
   0x9   :  { %s961_s21 = scalar_lea.vmem %s21_s13, 2048  ;;  %p966_p4 = scmp.lt.s32.totalorder %s21_s13, %s21_s13 }
   0xa   :  { %p962_p3 = scmp.ne.s32.totalorder %s21_s13, %s961_s21  ;;  %p967_p5 = scmp.lt.s32.totalorder %s961_s21, %s961_s21 }
   0xc   :  { %p968_p6 = por %p967_p5, %p966_p4 }
   0xe   :  { %p969_p7 = pnand %p968_p6, %p962_p3 }
  0x10   :  { %972 = shalt.err (!%p969_p7)
}
  0x11   :  { %s1024_s22 = smov 128   ;;  %s1025_s23 = smov 8  }
  0x12   :  { %26 = dma.hbm_to_vmem [thread:$0]  %s1180_s0, 2048, %s21_s13, [#allocation3], %s1024_s22, %s1024_s22, %s1025_s23  }
  0x13   :  { %s1026_s26 = smov [#allocation5]   ;;  %s973_s30 = scalar_lea.hbm %s1181_s1, 2048 }
  0x14   :  { %s32_s27 = sshll.u32 %s1026_s26, 4  ;;  %p974_p8 = scmp.ne.s32.totalorder %s1181_s1, %s973_s30  ;;  %s33_s27 = int_to_ptr.vmem [resolvable:$true] %s32_s27 }
  0x15   :  { %p977_p9 = scmp.lt.u32.totalorder %s973_s30, %s1181_s1 }
  0x17   :  { %p979_p10 = pnand %p977_p9, %p974_p8 }
  0x19   :  { %982 = shalt.err (!%p979_p10)
}
  0x1a   :  { %s983_s8 = scalar_lea.vmem %s33_s27, 2048  ;;  %p988_p12 = scmp.lt.s32.totalorder %s33_s27, %s33_s27 }
  0x1b   :  { %p984_p11 = scmp.ne.s32.totalorder %s33_s27, %s983_s8  ;;  %p989_p13 = scmp.lt.s32.totalorder %s983_s8, %s983_s8 }
  0x1d   :  { %p990_p0 = por %p989_p13, %p988_p12 }
  0x1f   :  { %p991_p1 = pnand %p990_p0, %p984_p11 }
  0x21   :  { %994 = shalt.err (!%p991_p1)
}
  0x22   :  { %38 = dma.hbm_to_vmem [thread:$0]  %s1181_s1, 2048, %s33_s27, [#allocation6], %s1024_s22, %s1024_s22, %s1025_s23  }
  0x23   :  { %1017 = dma.done.wait [#allocation3], 2048  }
  0x24   :  { %1018 = vsyncadd [#allocation3], 4294965248 }
  0x25   :  { %1019 = dma.done.wait [#allocation6], 2048  }
  0x26   :  { %1020 = vsyncadd [#allocation6], 4294965248  ;;  %v133_v0 = vld [vmem:[#allocation5] sm:$0xff]  ;;  %v134_v1 = vld [vmem:[#allocation5 + $0x8] sm:$0xff] }
  0x27   :  { %v135_v2 = vld [vmem:[#allocation5 + $0x10] sm:$0xff]  ;;  %v849_v3 = vpack.c.bf16 %v134_v1, %v133_v0  ;;  %v136_v4 = vld [vmem:[#allocation5 + $0x18] sm:$0xff]  ;;  %v137_v6 = vld [vmem:[#allocation5 + $0x20] sm:$0xff] }
  0x28   :  { %v853_v5 = vpack.c.bf16 %v136_v4, %v135_v2  ;;  %v138_v7 = vld [vmem:[#allocation5 + $0x28] sm:$0xff]  ;;  %v1078_v9 = vld [vmem:[#allocation2] sm:$0xff]  ;;  %v139_v10 = vld [vmem:[#allocation5 + $0x30] sm:$0xff] }
  0x29   :  { %850 = vmatprep.subr.bf16.mxu0 %v849_v3  ;;  %v857_v8 = vpack.c.bf16 %v138_v7, %v137_v6  ;;  %v140_v11 = vld [vmem:[#allocation5 + $0x38] sm:$0xff]  ;;  %769 = vmatprep.mubr.f32.mxu0 %v1078_v9  ;;  %v1081_v12 = vld [vmem:[#allocation2 + $0x10] sm:$0xff]  ;;  %v85_v13 = vmul.f32 %v1078_v9, %v1078_v9  ;;  %v1085_v14 = vld [vmem:[#allocation2 + $0x8] sm:$0xff] }
  0x2a   :  { %852 = vmatpush3.bf16.msra.mxu0 %v849_v3  ;;  %v87_v15 = vmul.f32 %v1081_v12, %v1081_v12  ;;  %v1089_v16 = vld [vmem:[#allocation2 + $0x18] sm:$0xff]  ;;  %v86_v17 = vmul.f32 %v1085_v14, %v1085_v14  ;;  %v861_v18 = vpack.c.bf16 %v140_v11, %v139_v10  ;;  %v141_v20 = vld [vmem:[#allocation5 + $0x40] sm:$0xff]  ;;  %v142_v21 = vld [vmem:[#allocation5 + $0x48] sm:$0xff]  ;;  %v881_v56 = vpack.c.bf16 %v1085_v14, %v1078_v9 }
  0x2b   :  { %854 = vmatprep.subr.bf16.mxu0 %v853_v5  ;;  %101 = vadd.xlane.f32.xlu0 %v85_v13  ;;  %v88_v19 = vmul.f32 %v1089_v16, %v1089_v16  ;;  %v1095_v22 = vld [vmem:[#allocation2 + $0x20] sm:$0xff]  ;;  %v1097_v23 = vld [vmem:[#allocation2 + $0x28] sm:$0xff]  ;;  %v865_v25 = vpack.c.bf16 %v142_v21, %v141_v20  ;;  %v143_v27 = vld [vmem:[#allocation5 + $0x50] sm:$0xff]  ;;  %v885_v57 = vpack.c.bf16 %v1089_v16, %v1081_v12 }
  0x2c   :  { %105 = vadd.xlane.f32.xlu1 %v87_v15  ;;  %v89_v24 = vmul.f32 %v1095_v22, %v1095_v22  ;;  %v90_v26 = vmul.f32 %v1097_v23, %v1097_v23  ;;  %v144_v28 = vld [vmem:[#allocation5 + $0x58] sm:$0xff]  ;;  %v1103_v29 = vld [vmem:[#allocation2 + $0x30] sm:$0xff]  ;;  %v145_v34 = vld [vmem:[#allocation5 + $0x60] sm:$0xff]  ;;  %882 = vmatprep.subr.bf16.mxu1 %v881_v56  ;;  %v889_v58 = vpack.c.bf16 %v1097_v23, %v1095_v22 }
  0x2d   :  { %v1105_v30 = vld [vmem:[#allocation2 + $0x38] sm:$0xff]  ;;  %v91_v31 = vmul.f32 %v1103_v29, %v1103_v29  ;;  %v869_v32 = vpack.c.bf16 %v144_v28, %v143_v27  ;;  %v146_v35 = vld [vmem:[#allocation5 + $0x68] sm:$0xff]  ;;  %v1111_v36 = vld [vmem:[#allocation2 + $0x40] sm:$0xff]  ;;  %884 = vmatpush3.bf16.msra.mxu1 %v881_v56 }
  0x2e   :  { %856 = vmatpush3.bf16.msra.mxu0 %v853_v5  ;;  %v92_v33 = vmul.f32 %v1105_v30, %v1105_v30  ;;  %v78_v37 = vld [vmem:[#allocation2 + $0x48] sm:$0xff]  ;;  %v93_v38 = vmul.f32 %v1111_v36, %v1111_v36  ;;  %v873_v39 = vpack.c.bf16 %v146_v35, %v145_v34  ;;  %v147_v41 = vld [vmem:[#allocation5 + $0x70] sm:$0xff]  ;;  %v148_v42 = vld [vmem:[#allocation5 + $0x78] sm:$0xff]  ;;  %886 = vmatprep.subr.bf16.mxu1 %v885_v57 }
  0x2f   :  { %858 = vmatprep.subr.bf16.mxu0 %v857_v8  ;;  %103 = vadd.xlane.f32.xlu0 %v86_v17  ;;  %v94_v40 = vmul.f32 %v78_v37, %v78_v37  ;;  %v79_v43 = vld [vmem:[#allocation2 + $0x50] sm:$0xff]  ;;  %v80_v44 = vld [vmem:[#allocation2 + $0x58] sm:$0xff]  ;;  %v877_v46 = vpack.c.bf16 %v148_v42, %v147_v41  ;;  %v81_v48 = vld [vmem:[#allocation2 + $0x60] sm:$0xff]  ;;  %v893_v59 = vpack.c.bf16 %v1105_v30, %v1103_v29 }
  0x30   :  { %107 = vadd.xlane.f32.xlu1 %v88_v19  ;;  %v95_v45 = vmul.f32 %v79_v43, %v79_v43  ;;  %v96_v47 = vmul.f32 %v80_v44, %v80_v44  ;;  %v82_v49 = vld [vmem:[#allocation2 + $0x68] sm:$0xff]  ;;  %v97_v50 = vmul.f32 %v81_v48, %v81_v48  ;;  %v1115_v52 = vld [vmem:[#allocation2 + $0x70] sm:$0xff]  ;;  %v1117_v53 = vld [vmem:[#allocation2 + $0x78] sm:$0xff]  ;;  %v897_v60 = vpack.c.bf16 %v78_v37, %v1111_v36 }
  0x31   :  { %v98_v51 = vmul.f32 %v82_v49, %v82_v49  ;;  %v99_v54 = vmul.f32 %v1115_v52, %v1115_v52  ;;  %v100_v55 = vmul.f32 %v1117_v53, %v1117_v53  ;;  %888 = vmatpush3.bf16.msra.mxu1 %v885_v57  ;;  %v901_v61 = vpack.c.bf16 %v80_v44, %v79_v43  ;;  %v1145_v6 = vld [vmem:[%s1182_s2] ss:$0 sm:$0xff]  ;;  %s1027_s2 = smov [#allocation7]  }
  0x32   :  { %860 = vmatpush3.bf16.msra.mxu0 %v857_v8  ;;  %890 = vmatprep.subr.bf16.mxu1 %v889_v58  ;;  %v905_v62 = vpack.c.bf16 %v82_v49, %v81_v48  ;;  %s659_s11 = sshll.u32 %s1027_s2, 4  ;;  %s660_s11 = int_to_ptr.vmem [resolvable:$true] %s659_s11 }
  0x33   :  { %862 = vmatprep.subr.bf16.mxu0 %v861_v18  ;;  %109 = vadd.xlane.f32.xlu0 %v89_v24  ;;  %s995_s12 = scalar_lea.vmem %s660_s11, 2048  ;;  %p1000_p3 = scmp.lt.s32.totalorder %s660_s11, %s660_s11 }
  0x34   :  { %111 = vadd.xlane.f32.xlu1 %v90_v26  ;;  %p996_p2 = scmp.ne.s32.totalorder %s660_s11, %s995_s12  ;;  %p1001_p4 = scmp.lt.s32.totalorder %s995_s12, %s995_s12 }
  0x35   :  { %892 = vmatpush3.bf16.msra.mxu1 %v889_v58 }
  0x36   :  { %864 = vmatpush3.bf16.msra.mxu0 %v861_v18  ;;  %894 = vmatprep.subr.bf16.mxu1 %v893_v59  ;;  %p1002_p5 = por %p1001_p4, %p1000_p3 }
  0x37   :  { %866 = vmatprep.subr.bf16.mxu0 %v865_v25  ;;  %113 = vadd.xlane.f32.xlu0 %v91_v31 }
  0x38   :  { %115 = vadd.xlane.f32.xlu1 %v92_v33  ;;  %p1003_p6 = pnand %p1002_p5, %p996_p2 }
  0x39   :  { %896 = vmatpush3.bf16.msra.mxu1 %v893_v59 }
  0x3a   :  { %868 = vmatpush3.bf16.msra.mxu0 %v865_v25  ;;  %898 = vmatprep.subr.bf16.mxu1 %v897_v60 }
  0x3b   :  { %870 = vmatprep.subr.bf16.mxu0 %v869_v32  ;;  %117 = vadd.xlane.f32.xlu0 %v93_v38 }
  0x3c   :  { %119 = vadd.xlane.f32.xlu1 %v94_v40 }
  0x3d   :  { %900 = vmatpush3.bf16.msra.mxu1 %v897_v60 }
  0x3e   :  { %872 = vmatpush3.bf16.msra.mxu0 %v869_v32  ;;  %902 = vmatprep.subr.bf16.mxu1 %v901_v61 }
  0x3f   :  { %874 = vmatprep.subr.bf16.mxu0 %v873_v39  ;;  %121 = vadd.xlane.f32.xlu0 %v95_v45 }
  0x40   :  { %123 = vadd.xlane.f32.xlu1 %v96_v47 }
  0x41   :  { %904 = vmatpush3.bf16.msra.mxu1 %v901_v61 }
  0x42   :  { %876 = vmatpush3.bf16.msra.mxu0 %v873_v39  ;;  %906 = vmatprep.subr.bf16.mxu1 %v905_v62 }
  0x43   :  { %878 = vmatprep.subr.bf16.mxu0 %v877_v46  ;;  %125 = vadd.xlane.f32.xlu0 %v97_v50 }
  0x44   :  { %127 = vadd.xlane.f32.xlu1 %v98_v51 }
  0x45   :  { %908 = vmatpush3.bf16.msra.mxu1 %v905_v62 }
  0x46   :  { %880 = vmatpush3.bf16.msra.mxu0 %v877_v46 }
  0x47   :  { %129 = vadd.xlane.f32.xlu0 %v99_v54 }
  0x48   :  { %131 = vadd.xlane.f32.xlu1 %v100_v55 }
  0x49   :  { %770 = vmatmul.mubr.f32.vlgmr.msra.gmra.mrb[0].mxu0 %v1085_v14 }
  0x4a   :  { %772 = vmatprep.mubr.f32.mxu0 %v1081_v12 }
  0x4d   :  { %773 = vmatmul.mubr.f32.gmra.mrb[2].mxu0 %v1089_v16 }
  0x4e   :  { %775 = vmatprep.mubr.f32.mxu0 %v1095_v22 }
  0x51   :  { %776 = vmatmul.mubr.f32.gmra.mrb[4].mxu0 %v1097_v23 }
  0x52   :  { %778 = vmatprep.mubr.f32.mxu0 %v1103_v29 }
  0x55   :  { %779 = vmatmul.mubr.f32.gmra.mrb[6].mxu0 %v1105_v30 }
  0x56   :  { %781 = vmatprep.mubr.f32.mxu0 %v1111_v36 }
  0x59   :  { %782 = vmatmul.mubr.f32.gmra.mrb[8].mxu0 %v78_v37 }
  0x5a   :  { %784 = vmatprep.mubr.f32.mxu0 %v79_v43 }
  0x5d   :  { %785 = vmatmul.mubr.f32.gmra.mrb[10].mxu0 %v80_v44 }
  0x5e   :  { %787 = vmatprep.mubr.f32.mxu0 %v81_v48 }
  0x61   :  { %788 = vmatmul.mubr.f32.gmra.mrb[12].mxu0 %v82_v49 }
  0x62   :  { %790 = vmatprep.mubr.f32.mxu0 %v1115_v52 }
  0x65   :  { %791 = vmatmul.mubr.f32.gmra.mrb[14].mxu0 %v1117_v53 }
  0xb8   :  { %v102_v63 = vpop.xlane.xlu0 %101 }
  0xb9   :  { %v106_v0 = vpop.xlane.xlu1 %105 }
  0xbc   :  { %v104_v2 = vpop.xlane.xlu0 %103 }
  0xbd   :  { %v108_v10 = vpop.xlane.xlu1 %107 }
  0xc0   :  { %v110_v26 = vpop.xlane.xlu0 %109 }
  0xc1   :  { %v112_v21 = vpop.xlane.xlu1 %111 }
  0xc4   :  { %v114_v38 = vpop.xlane.xlu0 %113 }
  0xc5   :  { %v116_v51 = vpop.xlane.xlu1 %115 }
  0xc8   :  { %v118_v59 = vpop.xlane.xlu0 %117 }
 0x11c   :  { %v771_v1 = vpop.f32.mrb[0].mxu0 }
 0x11d   :  { %v295_v3 = vmul.f32 2.0, %v771_v1  ;;  %v215_v4 = vpop.f32.mrb[1].mxu0 }
 0x11e   :  { %v294_v5 = vmul.f32 2.0, %v215_v4 }
 0x11f   :  { %v311_v7 = vsub.f32 %v104_v2, %v295_v3 }
 0x120   :  { %v310_v8 = vsub.f32 %v102_v63, %v294_v5  ;;  %v774_v9 = vpop.f32.mrb[2].mxu0 }
 0x121   :  { %v334_v11 = vadd.f32 %v1145_v6, %v311_v7  ;;  %v297_v12 = vmul.f32 2.0, %v774_v9  ;;  %v225_v13 = vpop.f32.mrb[3].mxu0 }
 0x122   :  { %v333_v14 = vadd.f32 %v1145_v6, %v310_v8  ;;  %v296_v15 = vmul.f32 2.0, %v225_v13 }
 0x123   :  { %v350_v16 = vmax.f32 %v334_v11, 0.0  ;;  %v313_v17 = vsub.f32 %v108_v10, %v297_v12  ;;  %v120_v10 = vpop.xlane.xlu1 %119 }
 0x124   :  { %v349_v18 = vmax.f32 %v333_v14, 0.0  ;;  %v312_v19 = vsub.f32 %v106_v0, %v296_v15  ;;  %v777_v20 = vpop.f32.mrb[4].mxu0 }
 0x125   :  { %v366_v22 = vsub.f32 0.0, %v350_v16  ;;  %v336_v23 = vadd.f32 %v1145_v6, %v313_v17  ;;  %v299_v24 = vmul.f32 2.0, %v777_v20  ;;  %v235_v25 = vpop.f32.mrb[5].mxu0  ;;  %v122_v17 = vpop.xlane.xlu0 %121 }
 0x126   :  { %v365_v27 = vsub.f32 0.0, %v349_v18  ;;  %v335_v28 = vadd.f32 %v1145_v6, %v312_v19  ;;  %v298_v29 = vmul.f32 2.0, %v235_v25 }
 0x127   :  { %v382_v30 = vmul.f32 0.5, %v366_v22  ;;  %v352_v31 = vmax.f32 %v336_v23, 0.0  ;;  %v315_v32 = vsub.f32 %v112_v21, %v299_v24 }
 0x128   :  { %v381_v33 = vmul.f32 0.5, %v365_v27  ;;  %v351_v34 = vmax.f32 %v335_v28, 0.0  ;;  %v314_v35 = vsub.f32 %v110_v26, %v298_v29  ;;  %v780_v36 = vpop.f32.mrb[6].mxu0 }
 0x129   :  { %v245_v37 = vpop.f32.mrb[7].mxu0  ;;  %v399_v43 = vmul.f32 1.442695, %v382_v30  ;;  %v368_v44 = vsub.f32 0.0, %v352_v31  ;;  %v338_v45 = vadd.f32 %v1145_v6, %v315_v32  ;;  %v301_v46 = vmul.f32 2.0, %v780_v36  ;;  %v124_v32 = vpop.xlane.xlu1 %123 }
 0x12a   :  { %v397_v39 = vmul.f32 1.442695, %v381_v33  ;;  %v367_v40 = vsub.f32 0.0, %v351_v34  ;;  %v337_v41 = vadd.f32 %v1145_v6, %v314_v35  ;;  %v300_v42 = vmul.f32 2.0, %v245_v37 }
 0x12b   :  { %v384_v60 = vmul.f32 0.5, %v368_v44  ;;  %v354_v61 = vmax.f32 %v338_v45, 0.0  ;;  %v317_v62 = vsub.f32 %v116_v51, %v301_v46  ;;  %v909_v33 = vpack.c.bf16 %v1117_v53, %v1115_v52 }
 0x12c   :  { %919 = vpow2.f32 %v397_v39  ;;  %v383_v47 = vmul.f32 0.5, %v367_v40  ;;  %v353_v48 = vmax.f32 %v337_v41, 0.0  ;;  %v316_v49 = vsub.f32 %v114_v38, %v300_v42  ;;  %v783_v50 = vpop.f32.mrb[8].mxu0  ;;  %v126_v38 = vpop.xlane.xlu0 %125 }
 0x12d   :  { %v255_v54 = vpop.f32.mrb[9].mxu0  ;;  %921 = vpow2.f32 %v399_v43  ;;  %v403_v4 = vmul.f32 1.442695, %v384_v60  ;;  %v370_v5 = vsub.f32 0.0, %v354_v61  ;;  %v340_v7 = vadd.f32 %v1145_v6, %v317_v62  ;;  %910 = vmatprep.subr.bf16.mxu1 %v909_v33 }
 0x12e   :  { %v401_v55 = vmul.f32 1.442695, %v383_v47  ;;  %v369_v56 = vsub.f32 0.0, %v353_v48  ;;  %v339_v57 = vadd.f32 %v1145_v6, %v316_v49  ;;  %v302_v58 = vmul.f32 2.0, %v255_v54  ;;  %912 = vmatpush3.bf16.msra.mxu1 %v909_v33  ;;  %v128_v49 = vpop.xlane.xlu1 %127 }
 0x12f   :  { %v303_v8 = vmul.f32 2.0, %v783_v50  ;;  %v386_v18 = vmul.f32 0.5, %v370_v5  ;;  %v356_v19 = vmax.f32 %v340_v7, 0.0 }
 0x130   :  { %v786_v63 = vpop.f32.mrb[10].mxu0  ;;  %923 = vpow2.f32 %v401_v55  ;;  %v385_v1 = vmul.f32 0.5, %v369_v56  ;;  %v355_v2 = vmax.f32 %v339_v57, 0.0  ;;  %v318_v3 = vsub.f32 %v118_v59, %v302_v58  ;;  %v130_v56 = vpop.xlane.xlu0 %129 }
 0x131   :  { %v265_v0 = vpop.f32.mrb[11].mxu0  ;;  %925 = vpow2.f32 %v403_v4  ;;  %v319_v20 = vsub.f32 %v120_v10, %v303_v8  ;;  %v407_v28 = vmul.f32 1.442695, %v386_v18  ;;  %v372_v29 = vsub.f32 0.0, %v356_v19 }
 0x132   :  { %v405_v13 = vmul.f32 1.442695, %v385_v1  ;;  %v371_v14 = vsub.f32 0.0, %v355_v2  ;;  %v341_v15 = vadd.f32 %v1145_v6, %v318_v3  ;;  %v304_v16 = vmul.f32 2.0, %v265_v0  ;;  %v132_v5 = vpop.xlane.xlu1 %131 }
 0x133   :  { %v342_v30 = vadd.f32 %v1145_v6, %v319_v20  ;;  %v305_v31 = vmul.f32 2.0, %v786_v63  ;;  %v388_v39 = vmul.f32 0.5, %v372_v29 }
 0x134   :  { %v789_v9 = vpop.f32.mrb[12].mxu0  ;;  %927 = vpow2.f32 %v405_v13  ;;  %v387_v24 = vmul.f32 0.5, %v371_v14  ;;  %v357_v25 = vmax.f32 %v341_v15, 0.0  ;;  %v320_v26 = vsub.f32 %v122_v17, %v304_v16 }
 0x135   :  { %v275_v11 = vpop.f32.mrb[13].mxu0  ;;  %929 = vpow2.f32 %v407_v28  ;;  %v358_v40 = vmax.f32 %v342_v30, 0.0  ;;  %v321_v41 = vsub.f32 %v124_v32, %v305_v31  ;;  %v411_v53 = vmul.f32 1.442695, %v388_v39 }
 0x136   :  { %v920_v12 = vpop.eup %919  ;;  %v409_v34 = vmul.f32 1.442695, %v387_v24  ;;  %v373_v35 = vsub.f32 0.0, %v357_v25  ;;  %v343_v36 = vadd.f32 %v1145_v6, %v320_v26  ;;  %v306_v37 = vmul.f32 2.0, %v275_v11 }
 0x137   :  { %445 = vxpose.xlu0.b32.start [1/16] %v920_v12, 128  ;;  %v922_v23 = vpop.eup %921  ;;  %v374_v46 = vsub.f32 0.0, %v358_v40  ;;  %v344_v47 = vadd.f32 %v1145_v6, %v321_v41  ;;  %v307_v48 = vmul.f32 2.0, %v789_v9 }
 0x138   :  { %v792_v21 = vpop.f32.mrb[14].mxu0  ;;  %931 = vpow2.f32 %v409_v34  ;;  %v389_v43 = vmul.f32 0.5, %v373_v35  ;;  %v359_v44 = vmax.f32 %v343_v36, 0.0  ;;  %v322_v45 = vsub.f32 %v126_v38, %v306_v37 }
 0x139   :  { %v285_v22 = vpop.f32.mrb[15].mxu0  ;;  %933 = vpow2.f32 %v411_v53  ;;  %v390_v57 = vmul.f32 0.5, %v374_v46  ;;  %v360_v58 = vmax.f32 %v344_v47, 0.0  ;;  %v323_v59 = vsub.f32 %v128_v49, %v307_v48 }
 0x13a   :  { %v924_v27 = vpop.eup %923  ;;  %v413_v50 = vmul.f32 1.442695, %v389_v43  ;;  %v375_v51 = vsub.f32 0.0, %v359_v44  ;;  %v345_v54 = vadd.f32 %v1145_v6, %v322_v45  ;;  %v308_v55 = vmul.f32 2.0, %v285_v22 }
 0x13b   :  { %446 = vxpose.xlu0.b32.cont [2/16] %v922_v23, 128  ;;  %v926_v42 = vpop.eup %925  ;;  %v415_v1 = vmul.f32 1.442695, %v390_v57  ;;  %v376_v2 = vsub.f32 0.0, %v360_v58  ;;  %v346_v3 = vadd.f32 %v1145_v6, %v323_v59  ;;  %v309_v4 = vmul.f32 2.0, %v792_v21 }
 0x13c   :  { %935 = vpow2.f32 %v413_v50  ;;  %v391_v61 = vmul.f32 0.5, %v375_v51  ;;  %v361_v62 = vmax.f32 %v345_v54, 0.0  ;;  %v324_v63 = vsub.f32 %v130_v56, %v308_v55 }
 0x13d   :  { %937 = vpow2.f32 %v415_v1  ;;  %v392_v10 = vmul.f32 0.5, %v376_v2  ;;  %v362_v11 = vmax.f32 %v346_v3, 0.0  ;;  %v325_v12 = vsub.f32 %v132_v5, %v309_v4 }
 0x13e   :  { %v928_v52 = vpop.eup %927  ;;  %v417_v7 = vmul.f32 1.442695, %v391_v61  ;;  %v377_v8 = vsub.f32 0.0, %v361_v62  ;;  %v347_v9 = vadd.f32 %v1145_v6, %v324_v63 }
 0x13f   :  { %447 = vxpose.xlu0.b32.cont [3/16] %v924_v27, 128  ;;  %v930_v60 = vpop.eup %929  ;;  %v419_v17 = vmul.f32 1.442695, %v392_v10  ;;  %v378_v18 = vsub.f32 0.0, %v362_v11  ;;  %v348_v19 = vadd.f32 %v1145_v6, %v325_v12 }
 0x140   :  { %939 = vpow2.f32 %v417_v7  ;;  %v393_v14 = vmul.f32 0.5, %v377_v8  ;;  %v363_v15 = vmax.f32 %v347_v9, 0.0 }
 0x141   :  { %941 = vpow2.f32 %v419_v17  ;;  %v394_v22 = vmul.f32 0.5, %v378_v18  ;;  %v364_v23 = vmax.f32 %v348_v19, 0.0 }
 0x142   :  { %v932_v0 = vpop.eup %931  ;;  %v421_v20 = vmul.f32 1.442695, %v393_v14  ;;  %v379_v21 = vsub.f32 0.0, %v363_v15 }
 0x143   :  { %448 = vxpose.xlu0.b32.cont [4/16] %v926_v42, 128  ;;  %v934_v13 = vpop.eup %933  ;;  %v423_v27 = vmul.f32 1.442695, %v394_v22  ;;  %v380_v28 = vsub.f32 0.0, %v364_v23 }
 0x144   :  { %943 = vpow2.f32 %v421_v20  ;;  %v395_v25 = vmul.f32 0.5, %v379_v21 }
 0x145   :  { %945 = vpow2.f32 %v423_v27  ;;  %v396_v30 = vmul.f32 0.5, %v380_v28 }
 0x146   :  { %v936_v16 = vpop.eup %935  ;;  %v425_v29 = vmul.f32 1.442695, %v395_v25 }
 0x147   :  { %449 = vxpose.xlu0.b32.cont [5/16] %v928_v52, 128  ;;  %v938_v24 = vpop.eup %937  ;;  %v427_v32 = vmul.f32 1.442695, %v396_v30 }
 0x148   :  { %947 = vpow2.f32 %v425_v29 }
 0x149   :  { %949 = vpow2.f32 %v427_v32 }
 0x14a   :  { %v940_v26 = vpop.eup %939 }
 0x14b   :  { %450 = vxpose.xlu0.b32.cont [6/16] %v930_v60, 128  ;;  %v942_v31 = vpop.eup %941 }
 0x14e   :  { %v944_v6 = vpop.eup %943 }
 0x14f   :  { %451 = vxpose.xlu0.b32.cont [7/16] %v932_v0, 128  ;;  %v946_v33 = vpop.eup %945 }
 0x152   :  { %v948_v34 = vpop.eup %947 }
 0x153   :  { %452 = vxpose.xlu0.b32.cont [8/16] %v934_v13, 128  ;;  %v950_v35 = vpop.eup %949 }
 0x157   :  { %453 = vxpose.xlu0.b32.cont [9/16] %v936_v16, 128 }
 0x15b   :  { %454 = vxpose.xlu0.b32.cont [10/16] %v938_v24, 128 }
 0x15f   :  { %455 = vxpose.xlu0.b32.cont [11/16] %v940_v26, 128 }
 0x163   :  { %456 = vxpose.xlu0.b32.cont [12/16] %v942_v31, 128 }
 0x167   :  { %457 = vxpose.xlu0.b32.cont [13/16] %v944_v6, 128 }
 0x16b   :  { %458 = vxpose.xlu0.b32.cont [14/16] %v946_v33, 128 }
 0x16f   :  { %459 = vxpose.xlu0.b32.cont [15/16] %v948_v34, 128 }
 0x173   :  { %460 = vxpose.xlu0.b32.end [16/16] %v950_v35, 128 }
 0x1b7   :  { %v461_v36 = vpop.trf.xlu0 }
 0x1b8   :  { %825 = vmatprep.mubr.f32.mxu1 %v461_v36 }
 0x1bb   :  { %v462_v37 = vpop.trf.xlu0 }
 0x1bc   :  { %826 = vmatmul.mubr.f32.vlgmr.msra.gmra.mrb[0].mxu1 %v462_v37 }
 0x1bf   :  { %v463_v38 = vpop.trf.xlu0 }
 0x1c0   :  { %828 = vmatprep.mubr.f32.mxu1 %v463_v38 }
 0x1c3   :  { %v464_v39 = vpop.trf.xlu0 }
 0x1c4   :  { %829 = vmatmul.mubr.f32.gmra.mrb[2].mxu1 %v464_v39 }
 0x1c7   :  { %v465_v40 = vpop.trf.xlu0 }
 0x1c8   :  { %831 = vmatprep.mubr.f32.mxu1 %v465_v40 }
 0x1cb   :  { %v466_v41 = vpop.trf.xlu0 }
 0x1cc   :  { %832 = vmatmul.mubr.f32.gmra.mrb[4].mxu1 %v466_v41 }
 0x1cf   :  { %v467_v42 = vpop.trf.xlu0 }
 0x1d0   :  { %834 = vmatprep.mubr.f32.mxu1 %v467_v42 }
 0x1d3   :  { %v468_v43 = vpop.trf.xlu0 }
 0x1d4   :  { %835 = vmatmul.mubr.f32.gmra.mrb[6].mxu1 %v468_v43 }
 0x1d7   :  { %v469_v44 = vpop.trf.xlu0 }
 0x1d8   :  { %837 = vmatprep.mubr.f32.mxu1 %v469_v44 }
 0x1db   :  { %v470_v45 = vpop.trf.xlu0 }
 0x1dc   :  { %838 = vmatmul.mubr.f32.gmra.mrb[8].mxu1 %v470_v45 }
 0x1df   :  { %v471_v52 = vpop.trf.xlu0 }
 0x1e0   :  { %840 = vmatprep.mubr.f32.mxu1 %v471_v52 }
 0x1e3   :  { %v472_v53 = vpop.trf.xlu0 }
 0x1e4   :  { %841 = vmatmul.mubr.f32.gmra.mrb[10].mxu1 %v472_v53 }
 0x1e7   :  { %v473_v46 = vpop.trf.xlu0 }
 0x1e8   :  { %843 = vmatprep.mubr.f32.mxu1 %v473_v46 }
 0x1eb   :  { %v474_v47 = vpop.trf.xlu0 }
 0x1ec   :  { %844 = vmatmul.mubr.f32.gmra.mrb[12].mxu1 %v474_v47 }
 0x1ef   :  { %v475_v48 = vpop.trf.xlu0 }
 0x1f0   :  { %846 = vmatprep.mubr.f32.mxu1 %v475_v48 }
 0x1f3   :  { %v476_v49 = vpop.trf.xlu0 }
 0x1f4   :  { %847 = vmatmul.mubr.f32.gmra.mrb[14].mxu1 %v476_v49 }
 0x28f   :  { %v827_v50 = vpop.f32.mrb[0].mxu1 }
 0x290   :  { %v543_v51 = vpop.f32.mrb[1].mxu1  ;;  %639 = vst [vmem:[#allocation7 + $0x8] sm:$0xff] %v827_v50 }
 0x291   :  { %638 = vst [vmem:[#allocation7] sm:$0xff] %v543_v51 }
 0x297   :  { %v830_v54 = vpop.f32.mrb[2].mxu1 }
 0x298   :  { %v553_v55 = vpop.f32.mrb[3].mxu1  ;;  %641 = vst [vmem:[#allocation7 + $0x18] sm:$0xff] %v830_v54 }
 0x299   :  { %640 = vst [vmem:[#allocation7 + $0x10] sm:$0xff] %v553_v55 }
 0x29f   :  { %v833_v56 = vpop.f32.mrb[4].mxu1 }
 0x2a0   :  { %v563_v57 = vpop.f32.mrb[5].mxu1  ;;  %643 = vst [vmem:[#allocation7 + $0x28] sm:$0xff] %v833_v56 }
 0x2a1   :  { %642 = vst [vmem:[#allocation7 + $0x20] sm:$0xff] %v563_v57 }
 0x2a7   :  { %v836_v58 = vpop.f32.mrb[6].mxu1 }
 0x2a8   :  { %v573_v59 = vpop.f32.mrb[7].mxu1  ;;  %645 = vst [vmem:[#allocation7 + $0x38] sm:$0xff] %v836_v58 }
 0x2a9   :  { %644 = vst [vmem:[#allocation7 + $0x30] sm:$0xff] %v573_v59 }
 0x2af   :  { %v839_v60 = vpop.f32.mrb[8].mxu1 }
 0x2b0   :  { %v583_v61 = vpop.f32.mrb[9].mxu1  ;;  %647 = vst [vmem:[#allocation7 + $0x48] sm:$0xff] %v839_v60 }
 0x2b1   :  { %646 = vst [vmem:[#allocation7 + $0x40] sm:$0xff] %v583_v61 }
 0x2b7   :  { %v842_v62 = vpop.f32.mrb[10].mxu1 }
 0x2b8   :  { %v593_v63 = vpop.f32.mrb[11].mxu1  ;;  %649 = vst [vmem:[#allocation7 + $0x58] sm:$0xff] %v842_v62 }
 0x2b9   :  { %648 = vst [vmem:[#allocation7 + $0x50] sm:$0xff] %v593_v63 }
 0x2bf   :  { %v845_v0 = vpop.f32.mrb[12].mxu1 }
 0x2c0   :  { %v603_v1 = vpop.f32.mrb[13].mxu1  ;;  %651 = vst [vmem:[#allocation7 + $0x68] sm:$0xff] %v845_v0 }
 0x2c1   :  { %650 = vst [vmem:[#allocation7 + $0x60] sm:$0xff] %v603_v1 }
 0x2c7   :  { %v848_v2 = vpop.f32.mrb[14].mxu1 }
 0x2c8   :  { %v613_v3 = vpop.f32.mrb[15].mxu1  ;;  %653 = vst [vmem:[#allocation7 + $0x78] sm:$0xff] %v848_v2 }
 0x2c9   :  { %652 = vst [vmem:[#allocation7 + $0x70] sm:$0xff] %v613_v3 }
 0x2ca   :  { %1006 = shalt.err (!%p1003_p6)
}
 0x2cb   :  { %s1007_s15 = scalar_lea.hbm %s1183_s3, 2048 }
 0x2cc   :  { %p1008_p7 = scmp.ne.s32.totalorder %s1183_s3, %s1007_s15  ;;  %p1011_p8 = scmp.lt.u32.totalorder %s1007_s15, %s1183_s3 }
 0x2ce   :  { %p1013_p9 = pnand %p1011_p8, %p1008_p7 }
 0x2d0   :  { %1016 = shalt.err (!%p1013_p9)
}
 0x2d1   :  { %665 = dma.vmem_to_hbm [thread:$0]  %s660_s11, 2048, %s1183_s3, [#allocation4], %s1024_s22, %s1024_s22, %s1025_s23  }
 0x2d2   :  { %1021 = dma.done.wait [#allocation4], 2048  }
 0x2d3   :  { %1022 = vsyncadd [#allocation4], 4294965248 }
 0x2d4   :  { %669 = vsyncpa [#allocation3], 1 }
 0x2d5   :  { %670 = vsyncpa [#allocation6], 1 }
 0x2d6   :  { %671 = vsyncpa [#allocation4], 1 }

</bundles_post_ra>
